<compile_context>
chip_gen: v6e
topology: v6e:2x2x1
jax: 0.10.0
libtpu: 0.0.40
codegen_flags: <defaults>
</compile_context>

<pallas_src>
import functools

import jax
import jax.numpy as jnp
from jax import lax
from jax.experimental import pallas as pl
from jax.experimental.pallas import tpu as pltpu

LN_EPS = 1e-5


def _round_up(x, m):
    return ((x + m - 1) // m) * m


def _pick_tn(d_out):
    """Largest lane-aligned output tile (<=512) that divides d_out."""
    for cand in (512, 256, 128):
        if d_out % cand == 0:
            return cand
    return d_out  # small / unaligned feature dim: use a full-width block


def _block_kernel(x_ref, r_ref, gamma_ref, beta_ref, w_ref, b_ref,
                  h_out_ref, res_out_ref, y_ref):
    # Grid: (i, j) = (token tile, mixer output-column tile); j is innermost.
    #   x_ref, r_ref:        (TM, D)   token tile (input dtype)
    #   gamma_ref, beta_ref: (1, D)    LayerNorm affine params
    #   w_ref:               (D, TN)   bf16 mixer weight column tile (x @ W)
    #   b_ref:               (1, TN)   mixer bias column tile
    #   h_out_ref:           (TM, TN)  mixer output tile
    #   res_out_ref:         (TM, D)   residual stream tile (resident over j)
    #   y_ref:               (TM, D)   bf16 scratch: normalized activations
    j = pl.program_id(1)

    # Residual add + LayerNorm only once per token tile (first j step); the
    # bf16 normalized tile is reused by every output-column tile.
    @pl.when(j == 0)
    def _():
        x = x_ref[...].astype(jnp.float32)
        r = r_ref[...].astype(jnp.float32)
        resid = x + r

        mean = jnp.mean(resid, axis=-1, keepdims=True)
        centered = resid - mean
        var = jnp.mean(centered * centered, axis=-1, keepdims=True)
        y = centered * lax.rsqrt(var + LN_EPS)
        y = (y * gamma_ref[...].astype(jnp.float32)
             + beta_ref[...].astype(jnp.float32))

        y_ref[...] = y.astype(y_ref.dtype)          # bf16 for the MXU
        res_out_ref[...] = resid.astype(res_out_ref.dtype)

    # Mixer matmul on the MXU: bf16 x bf16 -> f32 accumulator.
    h = jnp.dot(y_ref[...], w_ref[...], preferred_element_type=jnp.float32)
    h = h + b_ref[...].astype(jnp.float32)
    h_out_ref[...] = h.astype(h_out_ref.dtype)


@functools.partial(jax.jit,
                   static_argnames=("tile_m", "tile_n", "residual_dtype"))
def mamba_block_forward(hidden_states, residual, gamma, beta, w_mix, b_mix,
                        tile_m=256, tile_n=None, residual_dtype=jnp.float32):
    """hidden_states, residual: [B, L, D]. Returns (mixer_out, residual_out).

    tile_m: token tile (multiple of 8; 256 default fills the MXU on all gens;
            512 is also safe on v5e/v6e with D <= 4096).
    tile_n: mixer output-column tile (multiple of 128 dividing D_out).
    """
    B, L, D = hidden_states.shape
    D_out = w_mix.shape[1]
    N = B * L

    # ---- tiling ------------------------------------------------------------
    tm = min(tile_m, _round_up(N, 8))       # never bigger than (8-aligned) N
    assert tm % 8 == 0, "tile_m must be a multiple of 8"
    n_pad = pl.cdiv(N, tm) * tm             # pad rows instead of asserting

    tn = tile_n if tile_n is not None else _pick_tn(D_out)
    assert D_out % tn == 0, "tile_n must divide the mixer output dim"

    # ---- operand layout ----------------------------------------------------
    x2 = hidden_states.reshape(N, D)
    r2 = residual.reshape(N, D)
    if n_pad != N:
        pad = ((0, n_pad - N), (0, 0))
        x2 = jnp.pad(x2, pad)
        r2 = jnp.pad(r2, pad)
    gamma2 = gamma.reshape(1, D)
    beta2 = beta.reshape(1, D)
    w_bf16 = w_mix.astype(jnp.bfloat16)     # bf16 operand for the MXU
    bmix2 = b_mix.reshape(1, D_out)

    grid = (n_pad // tm, D_out // tn)

    # ---- VMEM budget (explicit, sized for v7x's 64 MiB) ---------------------
    in_b = hidden_states.dtype.itemsize
    out_b = hidden_states.dtype.itemsize
    res_b = jnp.dtype(residual_dtype).itemsize
    vmem_demand = (
        2 * 2 * tm * D * in_b        # x, r tiles (double-buffered)
        + 2 * D * tn * 2             # bf16 weight column tile (double-buffered)
        + 2 * tm * tn * out_b        # mixer output tile
        + 2 * tm * D * res_b         # residual output tile (resident+writeback)
        + tm * D * 2                 # bf16 normalized-activation scratch
        + 8 * (D + D_out) * 4        # gamma/beta/bias (tiny)
    )
    vmem_limit = int(min(max(int(vmem_demand * 1.3) + (2 << 20), 16 << 20),
                         64 << 20))

    cost = pl.CostEstimate(
        flops=2 * n_pad * D * D_out + 8 * n_pad * D,
        transcendentals=n_pad,                       # one rsqrt per token
        bytes_accessed=(2 * n_pad * D * in_b         # x, r
                        + n_pad * D_out * out_b      # mixer out
                        + n_pad * D * res_b          # residual out
                        + D * D_out * 2))            # bf16 weight

    h_out, res_out = pl.pallas_call(
        _block_kernel,
        out_shape=(
            jax.ShapeDtypeStruct((n_pad, D_out), hidden_states.dtype),
            jax.ShapeDtypeStruct((n_pad, D), residual_dtype),
        ),
        grid_spec=pltpu.PrefetchScalarGridSpec(
            num_scalar_prefetch=0,
            grid=grid,
            in_specs=[
                pl.BlockSpec((tm, D), lambda i, j: (i, 0)),    # hidden_states
                pl.BlockSpec((tm, D), lambda i, j: (i, 0)),    # residual
                pl.BlockSpec((1, D), lambda i, j: (0, 0)),     # gamma
                pl.BlockSpec((1, D), lambda i, j: (0, 0)),     # beta
                pl.BlockSpec((D, tn), lambda i, j: (0, j)),    # mixer W cols
                pl.BlockSpec((1, tn), lambda i, j: (0, j)),    # mixer bias
            ],
            out_specs=[
                pl.BlockSpec((tm, tn), lambda i, j: (i, j)),   # mixer out
                pl.BlockSpec((tm, D), lambda i, j: (i, 0)),    # residual out
            ],
            scratch_shapes=[pltpu.VMEM((tm, D), jnp.bfloat16)],
        ),
        compiler_params=pltpu.CompilerParams(
            # i: independent token tiles (megacore-shardable);
            # j: reuses the per-i scratch, so it must stay sequential.
            dimension_semantics=("parallel", "arbitrary"),
            vmem_limit_bytes=vmem_limit,
        ),
        cost_estimate=cost,
    )(x2, r2, gamma2, beta2, w_bf16, bmix2)

    h_out = h_out[:N].reshape(B, L, D_out)
    res_out = res_out[:N].reshape(B, L, D)
    return h_out, res_out


def _reference(hidden_states, residual, gamma, beta, w_mix, b_mix):
    """Pure-JAX reference mirroring the kernel's numerics (bf16 MXU operands)."""
    resid = hidden_states.astype(jnp.float32) + residual.astype(jnp.float32)
    mean = jnp.mean(resid, axis=-1, keepdims=True)
    var = jnp.mean((resid - mean) ** 2, axis=-1, keepdims=True)
    y = (resid - mean) * jax.lax.rsqrt(var + LN_EPS) * gamma + beta
    h = jnp.einsum("bld,de->ble",
                   y.astype(jnp.bfloat16), w_mix.astype(jnp.bfloat16),
                   preferred_element_type=jnp.float32) + b_mix
    return h.astype(hidden_states.dtype), resid


if __name__ == "__main__":
    # Small but lane-aligned demo shapes (D multiple of 128, per review).
    B, L, D = 2, 64, 256

    key = jax.random.PRNGKey(0)
    k1, k2, k3, k4, k5, k6 = jax.random.split(key, 6)

    hidden_states = jax.random.normal(k1, (B, L, D), dtype=jnp.float32)
    residual = jax.random.normal(k2, (B, L, D), dtype=jnp.float32)

    # LayerNorm affine params (perturbed so the affine path is exercised).
    gamma = 1.0 + 0.1 * jax.random.normal(k5, (D,), dtype=jnp.float32)
    beta = 0.1 * jax.random.normal(k6, (D,), dtype=jnp.float32)

    # Mixer (Linear D -> D) params, deterministic.
    w_mix = jax.random.normal(k3, (D, D), dtype=jnp.float32) * 0.05
    b_mix = jax.random.normal(k4, (D,), dtype=jnp.float32) * 0.01

    h_out, res_out = mamba_block_forward(hidden_states, residual, gamma, beta,
                                         w_mix, b_mix)
    jax.block_until_ready((h_out, res_out))

    h_ref, res_ref = _reference(hidden_states, residual, gamma, beta, w_mix,
                                b_mix)
    assert h_out.shape == (B, L, D) and res_out.shape == (B, L, D)
    assert jnp.allclose(h_out, h_ref, atol=1e-2, rtol=1e-2), (
        float(jnp.max(jnp.abs(h_out - h_ref))))
    assert jnp.allclose(res_out, res_ref, atol=1e-5, rtol=1e-5)

    print("KERNEL_OK")
</pallas_src>

<mosaic_0001>
module attributes {stable_mosaic.version = 11 : i64} {
  func.func @_block_kernel(%arg0: i32, %arg1: i32, %arg2: memref<128x256xf32, #tpu.memory_space<vmem>>, %arg3: memref<128x256xf32, #tpu.memory_space<vmem>>, %arg4: memref<1x256xf32, #tpu.memory_space<vmem>>, %arg5: memref<1x256xf32, #tpu.memory_space<vmem>>, %arg6: memref<256x256xbf16, #tpu.memory_space<vmem>>, %arg7: memref<1x256xf32, #tpu.memory_space<vmem>>, %arg8: memref<128x256xf32, #tpu.memory_space<vmem>>, %arg9: memref<128x256xf32, #tpu.memory_space<vmem>>, %arg10: memref<128x256xbf16, #tpu.memory_space<vmem>>) attributes {dimension_semantics = [#tpu.dimension_semantics<parallel>, #tpu.dimension_semantics<arbitrary>], iteration_bounds = array<i64: 1, 1>, scalar_prefetch = 0 : i64, scratch_operands = 1 : i64, tpu.core_type = #tpu.core_type<tc>, window_params = [{transform_indices = @transform_0, window_bounds = array<i64: 128, 256>}, {transform_indices = @transform_1, window_bounds = array<i64: 128, 256>}, {pipeline_mode = #tpu.pipeline_mode<synchronous>, transform_indices = @transform_2, window_bounds = array<i64: 1, 256>}, {pipeline_mode = #tpu.pipeline_mode<synchronous>, transform_indices = @transform_3, window_bounds = array<i64: 1, 256>}, {transform_indices = @transform_4, window_bounds = array<i64: 256, 256>}, {transform_indices = @transform_5, window_bounds = array<i64: 1, 256>}, {transform_indices = @transform_6, window_bounds = array<i64: 128, 256>}, {transform_indices = @transform_7, window_bounds = array<i64: 128, 256>}]} {
    %c0_i32 = arith.constant 0 : i32
    %0 = arith.cmpi eq, %arg1, %c0_i32 : i32
    %1 = arith.extui %0 : i1 to i32
    %c0_i32_0 = arith.constant 0 : i32
    %2 = arith.cmpi ne, %1, %c0_i32_0 : i32
    scf.if %2 {
      %c0_8 = arith.constant 0 : index
      %c0_9 = arith.constant 0 : index
      %10 = vector.load %arg2[%c0_8, %c0_9] : memref<128x256xf32, #tpu.memory_space<vmem>>, vector<128x256xf32>
      %c0_10 = arith.constant 0 : index
      %c0_11 = arith.constant 0 : index
      %11 = vector.load %arg3[%c0_10, %c0_11] : memref<128x256xf32, #tpu.memory_space<vmem>>, vector<128x256xf32>
      %12 = arith.addf %10, %11 : vector<128x256xf32>
      %cst_12 = arith.constant dense<0.000000e+00> : vector<128xf32>
      %13 = vector.multi_reduction <add>, %12, %cst_12 [1] : vector<128x256xf32> to vector<128xf32>
      %14 = vector.shape_cast %13 : vector<128xf32> to vector<128x1xf32>
      %cst_13 = arith.constant 2.560000e+02 : f32
      %15 = vector.broadcast %cst_13 : f32 to vector<128x1xf32>
      %16 = arith.divf %14, %15 : vector<128x1xf32>
      %17 = vector.broadcast %16 : vector<128x1xf32> to vector<128x256xf32>
      %18 = arith.subf %12, %17 : vector<128x256xf32>
      %19 = arith.mulf %18, %18 : vector<128x256xf32>
      %cst_14 = arith.constant dense<0.000000e+00> : vector<128xf32>
      %20 = vector.multi_reduction <add>, %19, %cst_14 [1] : vector<128x256xf32> to vector<128xf32>
      %21 = vector.shape_cast %20 : vector<128xf32> to vector<128x1xf32>
      %cst_15 = arith.constant 2.560000e+02 : f32
      %22 = vector.broadcast %cst_15 : f32 to vector<128x1xf32>
      %23 = arith.divf %21, %22 : vector<128x1xf32>
      %cst_16 = arith.constant 9.99999974E-6 : f32
      %24 = vector.broadcast %cst_16 : f32 to vector<128x1xf32>
      %25 = arith.addf %23, %24 : vector<128x1xf32>
      %26 = math.rsqrt %25 : vector<128x1xf32>
      %27 = vector.broadcast %26 : vector<128x1xf32> to vector<128x256xf32>
      %28 = arith.mulf %18, %27 : vector<128x256xf32>
      %c0_17 = arith.constant 0 : index
      %c0_18 = arith.constant 0 : index
      %29 = vector.load %arg4[%c0_17, %c0_18] : memref<1x256xf32, #tpu.memory_space<vmem>>, vector<1x256xf32>
      %30 = vector.broadcast %29 : vector<1x256xf32> to vector<128x256xf32>
      %31 = arith.mulf %28, %30 : vector<128x256xf32>
      %c0_19 = arith.constant 0 : index
      %c0_20 = arith.constant 0 : index
      %32 = vector.load %arg5[%c0_19, %c0_20] : memref<1x256xf32, #tpu.memory_space<vmem>>, vector<1x256xf32>
      %33 = vector.broadcast %32 : vector<1x256xf32> to vector<128x256xf32>
      %34 = arith.addf %31, %33 : vector<128x256xf32>
      %35 = arith.truncf %34 : vector<128x256xf32> to vector<128x256xbf16>
      %c0_21 = arith.constant 0 : index
      %c0_22 = arith.constant 0 : index
      %36 = vector.load %arg10[%c0_21, %c0_22] : memref<128x256xbf16, #tpu.memory_space<vmem>>, vector<128x256xbf16>
      tpu.vector_store %arg10[%c0_21, %c0_22], %35 {strides = array<i32>} : memref<128x256xbf16, #tpu.memory_space<vmem>>, vector<128x256xbf16>,
      %c0_23 = arith.constant 0 : index
      %c0_24 = arith.constant 0 : index
      %37 = vector.load %arg9[%c0_23, %c0_24] : memref<128x256xf32, #tpu.memory_space<vmem>>, vector<128x256xf32>
      tpu.vector_store %arg9[%c0_23, %c0_24], %12 {strides = array<i32>} : memref<128x256xf32, #tpu.memory_space<vmem>>, vector<128x256xf32>,
    } else {
    }
    %c0 = arith.constant 0 : index
    %c0_1 = arith.constant 0 : index
    %3 = vector.load %arg10[%c0, %c0_1] : memref<128x256xbf16, #tpu.memory_space<vmem>>, vector<128x256xbf16>
    %c0_2 = arith.constant 0 : index
    %c0_3 = arith.constant 0 : index
    %4 = vector.load %arg6[%c0_2, %c0_3] : memref<256x256xbf16, #tpu.memory_space<vmem>>, vector<256x256xbf16>
    %cst = arith.constant dense<0.000000e+00> : vector<128x256xf32>
    %5 = tpu.matmul %3, %4, %cst {dimension_numbers = #tpu.dot_dimension_numbers<[1], [0], [0], [1], [0, 0, 1, 1], [], []>} : vector<128x256xbf16>, vector<256x256xbf16>, vector<128x256xf32> -> vector<128x256xf32>
    %c0_4 = arith.constant 0 : index
    %c0_5 = arith.constant 0 : index
    %6 = vector.load %arg7[%c0_4, %c0_5] : memref<1x256xf32, #tpu.memory_space<vmem>>, vector<1x256xf32>
    %7 = vector.broadcast %6 : vector<1x256xf32> to vector<128x256xf32>
    %8 = arith.addf %5, %7 : vector<128x256xf32>
    %c0_6 = arith.constant 0 : index
    %c0_7 = arith.constant 0 : index
    %9 = vector.load %arg8[%c0_6, %c0_7] : memref<128x256xf32, #tpu.memory_space<vmem>>, vector<128x256xf32>
    tpu.vector_store %arg8[%c0_6, %c0_7], %8 {strides = array<i32>} : memref<128x256xf32, #tpu.memory_space<vmem>>, vector<128x256xf32>,
    return
  }
  func.func @transform_0(%arg0: i32, %arg1: i32) -> (i32, i32) {
    %c0_i32 = arith.constant 0 : i32
    %c0_i32_0 = arith.constant 0 : i32
    return %arg0, %c0_i32 : i32, i32
  }
  func.func @transform_1(%arg0: i32, %arg1: i32) -> (i32, i32) {
    %c0_i32 = arith.constant 0 : i32
    %c0_i32_0 = arith.constant 0 : i32
    return %arg0, %c0_i32 : i32, i32
  }
  func.func @transform_2(%arg0: i32, %arg1: i32) -> (i32, i32) {
    %c0_i32 = arith.constant 0 : i32
    %c0_i32_0 = arith.constant 0 : i32
    %c0_i32_1 = arith.constant 0 : i32
    return %c0_i32, %c0_i32_0 : i32, i32
  }
  func.func @transform_3(%arg0: i32, %arg1: i32) -> (i32, i32) {
    %c0_i32 = arith.constant 0 : i32
    %c0_i32_0 = arith.constant 0 : i32
    %c0_i32_1 = arith.constant 0 : i32
    return %c0_i32, %c0_i32_0 : i32, i32
  }
  func.func @transform_4(%arg0: i32, %arg1: i32) -> (i32, i32) {
    %c0_i32 = arith.constant 0 : i32
    %c0_i32_0 = arith.constant 0 : i32
    return %c0_i32, %arg1 : i32, i32
  }
  func.func @transform_5(%arg0: i32, %arg1: i32) -> (i32, i32) {
    %c0_i32 = arith.constant 0 : i32
    %c0_i32_0 = arith.constant 0 : i32
    return %c0_i32, %arg1 : i32, i32
  }
  func.func @transform_6(%arg0: i32, %arg1: i32) -> (i32, i32) {
    %c0_i32 = arith.constant 0 : i32
    return %arg0, %arg1 : i32, i32
  }
  func.func @transform_7(%arg0: i32, %arg1: i32) -> (i32, i32) {
    %c0_i32 = arith.constant 0 : i32
    %c0_i32_0 = arith.constant 0 : i32
    return %arg0, %c0_i32 : i32, i32
  }
}

</mosaic_0001>

<bundles_post_ra>
// kernel: mamba_block_forward.1
= control target key start
LH: loop header
LB: loop body
LE: loop exit
PB: predicated region body
PF: predicated region fallthrough
CT: control target
= control target key end

     0   :  { %13 = vsyncpa [#allocation4], 0  ;;  %s2140_s0 = inlined_call_operand.vmem [shape: f32[128,256], index: 0, kind: input, shape index: {}]   ;;  %s2141_s1 = inlined_call_operand.vmem [shape: f32[128,256], index: 1, kind: input, shape index: {}]   ;;  %s2142_s2 = inlined_call_operand.vmem [shape: f32[1,256], index: 2, kind: input, shape index: {}]   ;;  %s2143_s3 = inlined_call_operand.vmem [shape: f32[1,256], index: 3, kind: input, shape index: {}]   ;;  %s2144_s4 = inlined_call_operand.vmem [shape: bf16[256,256], index: 4, kind: input, shape index: {}]   ;;  %s2145_s5 = inlined_call_operand.vmem [shape: f32[1,256], index: 5, kind: input, shape index: {}]   ;;  %s2146_s6 = inlined_call_operand.hbm [shape: f32[128,256], index: 6, kind: output, shape index: {0}]   ;;  %s2147_s7 = inlined_call_operand.hbm [shape: f32[128,256], index: 7, kind: output, shape index: {1}]  }
   0x1   :  { %v31_v0 = vld [vmem:[%s2140_s0] sm:$0xff]  ;;  %v32_v1 = vld [vmem:[%s2140_s0 + $0x8] sm:$0xff]  ;;  %v33_v10 = vld [vmem:[%s2140_s0 + $0x10] sm:$0xff] }
   0x2   :  { %v63_v2 = vld [vmem:[%s2141_s1] sm:$0xff]  ;;  %v64_v3 = vld [vmem:[%s2141_s1 + $0x8] sm:$0xff]  ;;  %v34_v13 = vld [vmem:[%s2140_s0 + $0x18] sm:$0xff] }
   0x3   :  { %v1405_v4 = vadd.f32 %v63_v2, %v31_v0  ;;  %v47_v5 = vld [vmem:[%s2140_s0 + $0x80] sm:$0xff]  ;;  %v48_v6 = vld [vmem:[%s2140_s0 + $0x88] sm:$0xff]  ;;  %v1413_v7 = vadd.f32 %v64_v3, %v32_v1  ;;  %v65_v14 = vld [vmem:[%s2141_s1 + $0x10] sm:$0xff] }
   0x4   :  { %v79_v8 = vld [vmem:[%s2141_s1 + $0x80] sm:$0xff]  ;;  %v80_v9 = vld [vmem:[%s2141_s1 + $0x88] sm:$0xff]  ;;  %v66_v15 = vld [vmem:[%s2141_s1 + $0x18] sm:$0xff]  ;;  %v1441_v17 = vadd.f32 %v65_v14, %v33_v10 }
   0x5   :  { %584 = vst [vmem:[#allocation5] sm:$0xff] %v1405_v4  ;;  %v1425_v11 = vadd.f32 %v79_v8, %v47_v5  ;;  %v1427_v12 = vadd.f32 %v80_v9, %v48_v6  ;;  %v127_v16 = vadd.f32 %v1413_v7, %v1405_v4  ;;  %585 = vst [vmem:[#allocation5 + $0x8] sm:$0xff] %v1413_v7  ;;  %v49_v19 = vld [vmem:[%s2140_s0 + $0x90] sm:$0xff]  ;;  %v50_v20 = vld [vmem:[%s2140_s0 + $0x98] sm:$0xff] }
   0x6   :  { %v1443_v18 = vadd.f32 %v66_v15, %v34_v13  ;;  %v81_v21 = vld [vmem:[%s2141_s1 + $0x90] sm:$0xff]  ;;  %v82_v23 = vld [vmem:[%s2141_s1 + $0x98] sm:$0xff]  ;;  %v35_v25 = vld [vmem:[%s2140_s0 + $0x20] sm:$0xff]  ;;  %586 = vst [vmem:[#allocation5 + $0x10] sm:$0xff] %v1441_v17 }
   0x7   :  { %v151_v22 = vadd.f32 %v1427_v12, %v1425_v11  ;;  %600 = vst [vmem:[#allocation5 + $0x80] sm:$0xff] %v1425_v11  ;;  %601 = vst [vmem:[#allocation5 + $0x88] sm:$0xff] %v1427_v12  ;;  %v1461_v24 = vadd.f32 %v81_v21, %v49_v19  ;;  %v36_v26 = vld [vmem:[%s2140_s0 + $0x28] sm:$0xff]  ;;  %128 = vadd.xlane.f32.xlu0 %v127_v16  ;;  %v1473_v28 = vadd.f32 %v82_v23, %v50_v20  ;;  %v67_v29 = vld [vmem:[%s2141_s1 + $0x20] sm:$0xff] }
   0x8   :  { %v130_v27 = vadd.f32 %v1443_v18, %v1441_v17  ;;  %587 = vst [vmem:[#allocation5 + $0x18] sm:$0xff] %v1443_v18  ;;  %v68_v30 = vld [vmem:[%s2141_s1 + $0x28] sm:$0xff]  ;;  %v37_v31 = vld [vmem:[%s2140_s0 + $0x30] sm:$0xff]  ;;  %v1485_v32 = vadd.f32 %v67_v29, %v35_v25  ;;  %v38_v34 = vld [vmem:[%s2140_s0 + $0x38] sm:$0xff] }
   0x9   :  { %152 = vadd.xlane.f32.xlu1 %v151_v22  ;;  %602 = vst [vmem:[#allocation5 + $0x90] sm:$0xff] %v1461_v24  ;;  %v1487_v33 = vadd.f32 %v68_v30, %v36_v26  ;;  %v69_v35 = vld [vmem:[%s2141_s1 + $0x30] sm:$0xff]  ;;  %v70_v36 = vld [vmem:[%s2141_s1 + $0x38] sm:$0xff]  ;;  %v154_v37 = vadd.f32 %v1473_v28, %v1461_v24  ;;  %603 = vst [vmem:[#allocation5 + $0x98] sm:$0xff] %v1473_v28 }
   0xa   :  { %v1501_v38 = vadd.f32 %v69_v35, %v37_v31  ;;  %v1503_v39 = vadd.f32 %v70_v36, %v38_v34  ;;  %v51_v40 = vld [vmem:[%s2140_s0 + $0xa0] sm:$0xff]  ;;  %v52_v41 = vld [vmem:[%s2140_s0 + $0xa8] sm:$0xff]  ;;  %588 = vst [vmem:[#allocation5 + $0x20] sm:$0xff] %v1485_v32  ;;  %v53_v45 = vld [vmem:[%s2140_s0 + $0xb0] sm:$0xff] }
   0xb   :  { %v83_v42 = vld [vmem:[%s2141_s1 + $0xa0] sm:$0xff]  ;;  %589 = vst [vmem:[#allocation5 + $0x28] sm:$0xff] %v1487_v33  ;;  %v84_v43 = vld [vmem:[%s2141_s1 + $0xa8] sm:$0xff]  ;;  %v54_v46 = vld [vmem:[%s2140_s0 + $0xb8] sm:$0xff]  ;;  %131 = vadd.xlane.f32.xlu0 %v130_v27  ;;  %v133_v47 = vadd.f32 %v1487_v33, %v1485_v32 }
   0xc   :  { %v1519_v44 = vadd.f32 %v83_v42, %v51_v40  ;;  %590 = vst [vmem:[#allocation5 + $0x30] sm:$0xff] %v1501_v38  ;;  %591 = vst [vmem:[#allocation5 + $0x38] sm:$0xff] %v1503_v39  ;;  %v1531_v48 = vadd.f32 %v84_v43, %v52_v41  ;;  %v85_v49 = vld [vmem:[%s2141_s1 + $0xb0] sm:$0xff]  ;;  %v86_v50 = vld [vmem:[%s2141_s1 + $0xb8] sm:$0xff]  ;;  %v136_v52 = vadd.f32 %v1503_v39, %v1501_v38 }
   0xd   :  { %v39_v51 = vld [vmem:[%s2140_s0 + $0x40] sm:$0xff]  ;;  %155 = vadd.xlane.f32.xlu1 %v154_v37  ;;  %v1545_v53 = vadd.f32 %v85_v49, %v53_v45  ;;  %v1547_v54 = vadd.f32 %v86_v50, %v54_v46  ;;  %v40_v55 = vld [vmem:[%s2140_s0 + $0x48] sm:$0xff]  ;;  %v41_v60 = vld [vmem:[%s2140_s0 + $0x50] sm:$0xff] }
   0xe   :  { %604 = vst [vmem:[#allocation5 + $0xa0] sm:$0xff] %v1519_v44  ;;  %v71_v56 = vld [vmem:[%s2141_s1 + $0x40] sm:$0xff]  ;;  %v72_v57 = vld [vmem:[%s2141_s1 + $0x48] sm:$0xff]  ;;  %605 = vst [vmem:[#allocation5 + $0xa8] sm:$0xff] %v1531_v48  ;;  %v157_v3 = vadd.f32 %v1531_v48, %v1519_v44 }
   0xf   :  { %v1559_v58 = vadd.f32 %v71_v56, %v39_v51  ;;  %v1561_v59 = vadd.f32 %v72_v57, %v40_v55  ;;  %v42_v61 = vld [vmem:[%s2140_s0 + $0x58] sm:$0xff]  ;;  %v73_v62 = vld [vmem:[%s2141_s1 + $0x50] sm:$0xff]  ;;  %606 = vst [vmem:[#allocation5 + $0xb0] sm:$0xff] %v1545_v53  ;;  %607 = vst [vmem:[#allocation5 + $0xb8] sm:$0xff] %v1547_v54  ;;  %134 = vadd.xlane.f32.xlu0 %v133_v47  ;;  %v160_v10 = vadd.f32 %v1547_v54, %v1545_v53 }
  0x10   :  { %v74_v63 = vld [vmem:[%s2141_s1 + $0x58] sm:$0xff]  ;;  %v1577_v0 = vadd.f32 %v73_v62, %v41_v60  ;;  %v55_v1 = vld [vmem:[%s2140_s0 + $0xc0] sm:$0xff]  ;;  %v56_v2 = vld [vmem:[%s2140_s0 + $0xc8] sm:$0xff] }
  0x11   :  { %592 = vst [vmem:[#allocation5 + $0x40] sm:$0xff] %v1559_v58  ;;  %593 = vst [vmem:[#allocation5 + $0x48] sm:$0xff] %v1561_v59  ;;  %v1589_v5 = vadd.f32 %v74_v63, %v42_v61  ;;  %v87_v6 = vld [vmem:[%s2141_s1 + $0xc0] sm:$0xff]  ;;  %v88_v8 = vld [vmem:[%s2141_s1 + $0xc8] sm:$0xff]  ;;  %137 = vadd.xlane.f32.xlu1 %v136_v52  ;;  %v139_v31 = vadd.f32 %v1561_v59, %v1559_v58 }
  0x12   :  { %v57_v9 = vld [vmem:[%s2140_s0 + $0xd0] sm:$0xff]  ;;  %594 = vst [vmem:[#allocation5 + $0x50] sm:$0xff] %v1577_v0  ;;  %v1603_v13 = vadd.f32 %v87_v6, %v55_v1  ;;  %v1605_v14 = vadd.f32 %v88_v8, %v56_v2  ;;  %v58_v15 = vld [vmem:[%s2140_s0 + $0xd8] sm:$0xff]  ;;  %v43_v22 = vld [vmem:[%s2140_s0 + $0x60] sm:$0xff] }
  0x13   :  { %v89_v16 = vld [vmem:[%s2141_s1 + $0xd0] sm:$0xff]  ;;  %v90_v19 = vld [vmem:[%s2141_s1 + $0xd8] sm:$0xff]  ;;  %595 = vst [vmem:[#allocation5 + $0x58] sm:$0xff] %v1589_v5  ;;  %v44_v23 = vld [vmem:[%s2140_s0 + $0x68] sm:$0xff]  ;;  %158 = vadd.xlane.f32.xlu0 %v157_v3  ;;  %v142_v40 = vadd.f32 %v1589_v5, %v1577_v0 }
  0x14   :  { %v1617_v20 = vadd.f32 %v89_v16, %v57_v9  ;;  %v1619_v21 = vadd.f32 %v90_v19, %v58_v15  ;;  %v75_v25 = vld [vmem:[%s2141_s1 + $0x60] sm:$0xff]  ;;  %608 = vst [vmem:[#allocation5 + $0xc0] sm:$0xff] %v1603_v13  ;;  %609 = vst [vmem:[#allocation5 + $0xc8] sm:$0xff] %v1605_v14  ;;  %v76_v26 = vld [vmem:[%s2141_s1 + $0x68] sm:$0xff]  ;;  %v163_v57 = vadd.f32 %v1605_v14, %v1603_v13 }
  0x15   :  { %v1635_v27 = vadd.f32 %v75_v25, %v43_v22  ;;  %v45_v29 = vld [vmem:[%s2140_s0 + $0x70] sm:$0xff]  ;;  %v46_v30 = vld [vmem:[%s2140_s0 + $0x78] sm:$0xff]  ;;  %v1647_v34 = vadd.f32 %v76_v26, %v44_v23  ;;  %v59_v37 = vld [vmem:[%s2140_s0 + $0xe0] sm:$0xff]  ;;  %161 = vadd.xlane.f32.xlu1 %v160_v10 }
  0x16   :  { %610 = vst [vmem:[#allocation5 + $0xd0] sm:$0xff] %v1617_v20  ;;  %611 = vst [vmem:[#allocation5 + $0xd8] sm:$0xff] %v1619_v21  ;;  %v77_v35 = vld [vmem:[%s2141_s1 + $0x70] sm:$0xff]  ;;  %v78_v36 = vld [vmem:[%s2141_s1 + $0x78] sm:$0xff]  ;;  %v166_v61 = vadd.f32 %v1619_v21, %v1617_v20 }
  0x17   :  { %596 = vst [vmem:[#allocation5 + $0x60] sm:$0xff] %v1635_v27  ;;  %v1661_v41 = vadd.f32 %v77_v35, %v45_v29  ;;  %v1663_v42 = vadd.f32 %v78_v36, %v46_v30  ;;  %v60_v43 = vld [vmem:[%s2140_s0 + $0xe8] sm:$0xff]  ;;  %v91_v45 = vld [vmem:[%s2141_s1 + $0xe0] sm:$0xff]  ;;  %597 = vst [vmem:[#allocation5 + $0x68] sm:$0xff] %v1647_v34  ;;  %140 = vadd.xlane.f32.xlu0 %v139_v31  ;;  %v145_v62 = vadd.f32 %v1647_v34, %v1635_v27 }
  0x18   :  { %v92_v46 = vld [vmem:[%s2141_s1 + $0xe8] sm:$0xff]  ;;  %v1675_v47 = vadd.f32 %v91_v45, %v59_v37  ;;  %v61_v50 = vld [vmem:[%s2140_s0 + $0xf0] sm:$0xff]  ;;  %v62_v51 = vld [vmem:[%s2140_s0 + $0xf8] sm:$0xff] }
  0x19   :  { %v1677_v49 = vadd.f32 %v92_v46, %v60_v43  ;;  %v93_v52 = vld [vmem:[%s2141_s1 + $0xf0] sm:$0xff]  ;;  %598 = vst [vmem:[#allocation5 + $0x70] sm:$0xff] %v1661_v41  ;;  %599 = vst [vmem:[#allocation5 + $0x78] sm:$0xff] %v1663_v42  ;;  %v94_v55 = vld [vmem:[%s2141_s1 + $0xf8] sm:$0xff]  ;;  %143 = vadd.xlane.f32.xlu1 %v142_v40  ;;  %v148_v63 = vadd.f32 %v1663_v42, %v1661_v41 }
  0x1a   :  { %v1693_v56 = vadd.f32 %v93_v52, %v61_v50  ;;  %612 = vst [vmem:[#allocation5 + $0xe0] sm:$0xff] %v1675_v47  ;;  %v1699_v60 = vadd.f32 %v94_v55, %v62_v51 }
  0x1b   :  { %613 = vst [vmem:[#allocation5 + $0xe8] sm:$0xff] %v1677_v49  ;;  %164 = vadd.xlane.f32.xlu0 %v163_v57  ;;  %v169_v1 = vadd.f32 %v1677_v49, %v1675_v47 }
  0x1c   :  { %614 = vst [vmem:[#allocation5 + $0xf0] sm:$0xff] %v1693_v56  ;;  %615 = vst [vmem:[#allocation5 + $0xf8] sm:$0xff] %v1699_v60  ;;  %v172_v2 = vadd.f32 %v1699_v60, %v1693_v56 }
  0x1d   :  { %167 = vadd.xlane.f32.xlu1 %v166_v61 }
  0x1f   :  { %146 = vadd.xlane.f32.xlu0 %v145_v62 }
  0x21   :  { %149 = vadd.xlane.f32.xlu1 %v148_v63 }
  0x22   :  { %14 = vsyncpa [#allocation6], 0  ;;  %v1225_v3 = vld [vmem:[%s2144_s4 + $0x74] ss:$8 sps:$4 sm:$0xff]   ;;  %v1227_v6 = vld [vmem:[%s2144_s4 + $0x70] ss:$8 sps:$4 sm:$0xff]  }
  0x23   :  { %170 = vadd.xlane.f32.xlu0 %v169_v1  ;;  %v1228_v8 = vld [vmem:[%s2144_s4 + $0x64] ss:$8 sps:$4 sm:$0xff]   ;;  %916 = vmatprep.subr.bf16.mxu0 %v1225_v3  ;;  %v1230_v9 = vld [vmem:[%s2144_s4 + $0x60] ss:$8 sps:$4 sm:$0xff]   ;;  %v1231_v10 = vld [vmem:[%s2144_s4 + $0x54] ss:$8 sps:$4 sm:$0xff]  }
  0x24   :  { %1189 = vmatprep.subr.bf16.mxu1 %v1225_v3  ;;  %917 = vmatpush1.bf16.msra.mxu0 %v1227_v6  ;;  %v1233_v15 = vld [vmem:[%s2144_s4 + $0x50] ss:$8 sps:$4 sm:$0xff]   ;;  %v1234_v16 = vld [vmem:[%s2144_s4 + $0x44] ss:$8 sps:$4 sm:$0xff]   ;;  %v1236_v19 = vld [vmem:[%s2144_s4 + $0x40] ss:$8 sps:$4 sm:$0xff]  }
  0x25   :  { %173 = vadd.xlane.f32.xlu1 %v172_v2  ;;  %1205 = vmatpush1.bf16.msra.mxu1 %v1227_v6  ;;  %v1237_v22 = vld [vmem:[%s2144_s4 + $0x34] ss:$8 sps:$4 sm:$0xff]   ;;  %v1239_v23 = vld [vmem:[%s2144_s4 + $0x30] ss:$8 sps:$4 sm:$0xff]   ;;  %v1240_v25 = vld [vmem:[%s2144_s4 + $0x24] ss:$8 sps:$4 sm:$0xff]  }
  0x26   :  { %918 = vmatprep.subr.bf16.mxu0 %v1228_v8  ;;  %1190 = vmatprep.subr.bf16.mxu1 %v1228_v8  ;;  %v1242_v26 = vld [vmem:[%s2144_s4 + $0x20] ss:$8 sps:$4 sm:$0xff]   ;;  %v1243_v29 = vld [vmem:[%s2144_s4 + $0x14] ss:$8 sps:$4 sm:$0xff]   ;;  %v1245_v30 = vld [vmem:[%s2144_s4 + $0x10] ss:$8 sps:$4 sm:$0xff]  }
  0x27   :  { %v1246_v31 = vld [vmem:[%s2144_s4 + $0x4] ss:$8 sps:$4 sm:$0xff]   ;;  %v1248_v35 = vld [vmem:[%s2144_s4] ss:$8 sps:$4 sm:$0xff]   ;;  %v1249_v36 = vld [vmem:[%s2144_s4 + $0xf4] ss:$8 sps:$4 sm:$0xff]  }
  0x28   :  { %919 = vmatpush1.bf16.msra.mxu0 %v1230_v9 }
  0x29   :  { %1206 = vmatpush1.bf16.msra.mxu1 %v1230_v9  ;;  %920 = vmatprep.subr.bf16.mxu0 %v1231_v10 }
  0x2a   :  { %1191 = vmatprep.subr.bf16.mxu1 %v1231_v10 }
  0x2c   :  { %921 = vmatpush1.bf16.msra.mxu0 %v1233_v15 }
  0x2d   :  { %1207 = vmatpush1.bf16.msra.mxu1 %v1233_v15  ;;  %922 = vmatprep.subr.bf16.mxu0 %v1234_v16 }
  0x2e   :  { %1192 = vmatprep.subr.bf16.mxu1 %v1234_v16 }
  0x30   :  { %923 = vmatpush1.bf16.msra.mxu0 %v1236_v19 }
  0x31   :  { %1208 = vmatpush1.bf16.msra.mxu1 %v1236_v19  ;;  %924 = vmatprep.subr.bf16.mxu0 %v1237_v22 }
  0x32   :  { %1193 = vmatprep.subr.bf16.mxu1 %v1237_v22 }
  0x34   :  { %925 = vmatpush1.bf16.msra.mxu0 %v1239_v23 }
  0x35   :  { %1209 = vmatpush1.bf16.msra.mxu1 %v1239_v23  ;;  %926 = vmatprep.subr.bf16.mxu0 %v1240_v25 }
  0x36   :  { %1194 = vmatprep.subr.bf16.mxu1 %v1240_v25 }
  0x38   :  { %927 = vmatpush1.bf16.msra.mxu0 %v1242_v26 }
  0x39   :  { %1210 = vmatpush1.bf16.msra.mxu1 %v1242_v26  ;;  %928 = vmatprep.subr.bf16.mxu0 %v1243_v29 }
  0x3a   :  { %1195 = vmatprep.subr.bf16.mxu1 %v1243_v29 }
  0x3c   :  { %929 = vmatpush1.bf16.msra.mxu0 %v1245_v30 }
  0x3d   :  { %1211 = vmatpush1.bf16.msra.mxu1 %v1245_v30  ;;  %930 = vmatprep.subr.bf16.mxu0 %v1246_v31 }
  0x3e   :  { %1196 = vmatprep.subr.bf16.mxu1 %v1246_v31 }
  0x40   :  { %931 = vmatpush1.bf16.msra.mxu0 %v1248_v35 }
  0x41   :  { %1212 = vmatpush1.bf16.msra.mxu1 %v1248_v35  ;;  %932 = vmatprep.subr.bf16.mxu0 %v1249_v36 }
  0x42   :  { %1197 = vmatprep.subr.bf16.mxu1 %v1249_v36 }
  0x90   :  { %v129_v37 = vpop.xlane.xlu0 %128 }
  0x91   :  { %v176_v40 = vmul.f32 0.00390625, %v129_v37 }
  0x92   :  { %v153_v43 = vpop.xlane.xlu1 %152 }
  0x93   :  { %v184_v45 = vmul.f32 0.00390625, %v153_v43  ;;  %v1765_v46 = vsub.f32 %v1405_v4, %v176_v40  ;;  %v1768_v50 = vsub.f32 %v1413_v7, %v176_v40 }
  0x94   :  { %v132_v55 = vpop.xlane.xlu0 %131 }
  0x95   :  { %v1771_v51 = vsub.f32 %v1425_v11, %v184_v45  ;;  %v1774_v52 = vsub.f32 %v1427_v12, %v184_v45  ;;  %v177_v57 = vmul.f32 0.00390625, %v132_v55  ;;  %v224_v62 = vmul.f32 %v1765_v46, %v1765_v46 }
  0x96   :  { %v156_v61 = vpop.xlane.xlu1 %155  ;;  %v225_v63 = vmul.f32 %v1768_v50, %v1768_v50 }
  0x97   :  { %v185_v4 = vmul.f32 0.00390625, %v156_v61  ;;  %v240_v7 = vmul.f32 %v1771_v51, %v1771_v51  ;;  %v241_v11 = vmul.f32 %v1774_v52, %v1774_v52  ;;  %v1785_v1 = vsub.f32 %v1441_v17, %v177_v57 }
  0x98   :  { %v1788_v12 = vsub.f32 %v1443_v18, %v177_v57  ;;  %v256_v2 = vadd.f32 %v225_v63, %v224_v62  ;;  %v135_v8 = vpop.xlane.xlu0 %134 }
  0x99   :  { %v1791_v3 = vsub.f32 %v1461_v24, %v185_v4  ;;  %v1794_v6 = vsub.f32 %v1473_v28, %v185_v4  ;;  %v178_v9 = vmul.f32 0.00390625, %v135_v8  ;;  %v280_v15 = vadd.f32 %v241_v11, %v240_v7 }
  0x9a   :  { %257 = vadd.xlane.f32.xlu0 %v256_v2  ;;  %v138_v10 = vpop.xlane.xlu1 %137  ;;  %v226_v16 = vmul.f32 %v1785_v1, %v1785_v1  ;;  %v227_v17 = vmul.f32 %v1788_v12, %v1788_v12 }
  0x9b   :  { %v179_v18 = vmul.f32 0.00390625, %v138_v10  ;;  %v242_v19 = vmul.f32 %v1791_v3, %v1791_v3  ;;  %v243_v24 = vmul.f32 %v1794_v6, %v1794_v6  ;;  %v1805_v28 = vsub.f32 %v1485_v32, %v178_v9 }
  0x9c   :  { %v1808_v22 = vsub.f32 %v1487_v33, %v178_v9  ;;  %v259_v23 = vadd.f32 %v227_v17, %v226_v16  ;;  %v159_v29 = vpop.xlane.xlu0 %158  ;;  %v1252_v16 = vld [vmem:[%s2144_s4 + $0xe4] ss:$8 sps:$4 sm:$0xff]  }
  0x9d   :  { %v1811_v25 = vsub.f32 %v1501_v38, %v179_v18  ;;  %v1814_v26 = vsub.f32 %v1503_v39, %v179_v18  ;;  %v186_v30 = vmul.f32 0.00390625, %v159_v29  ;;  %v283_v35 = vadd.f32 %v243_v24, %v242_v19 }
  0x9e   :  { %281 = vadd.xlane.f32.xlu0 %v280_v15  ;;  %260 = vadd.xlane.f32.xlu1 %v259_v23  ;;  %v162_v31 = vpop.xlane.xlu1 %161  ;;  %v228_v32 = vmul.f32 %v1805_v28, %v1805_v28  ;;  %v229_v33 = vmul.f32 %v1808_v22, %v1808_v22  ;;  %v1254_v23 = vld [vmem:[%s2144_s4 + $0xe0] ss:$8 sps:$4 sm:$0xff]  }
  0x9f   :  { %v187_v36 = vmul.f32 0.00390625, %v162_v31  ;;  %v230_v38 = vmul.f32 %v1811_v25, %v1811_v25  ;;  %v231_v39 = vmul.f32 %v1814_v26, %v1814_v26  ;;  %v1825_v37 = vsub.f32 %v1519_v44, %v186_v30 }
  0xa0   :  { %v1828_v40 = vsub.f32 %v1531_v48, %v186_v30  ;;  %v262_v43 = vadd.f32 %v229_v33, %v228_v32  ;;  %v141_v57 = vpop.xlane.xlu0 %140 }
  0xa1   :  { %v1831_v45 = vsub.f32 %v1545_v53, %v187_v36  ;;  %v1834_v55 = vsub.f32 %v1547_v54, %v187_v36  ;;  %v180_v61 = vmul.f32 0.00390625, %v141_v57  ;;  %v265_v63 = vadd.f32 %v231_v39, %v230_v38  ;;  %v1251_v53 = vld [vmem:[%s2144_s4 + $0xf0] ss:$8 sps:$4 sm:$0xff]  }
  0xa2   :  { %284 = vadd.xlane.f32.xlu1 %v283_v35  ;;  %263 = vadd.xlane.f32.xlu0 %v262_v43  ;;  %v144_v62 = vpop.xlane.xlu1 %143  ;;  %v244_v44 = vmul.f32 %v1825_v37, %v1825_v37  ;;  %v245_v48 = vmul.f32 %v1828_v40, %v1828_v40 }
  0xa3   :  { %v181_v4 = vmul.f32 0.00390625, %v144_v62  ;;  %v246_v54 = vmul.f32 %v1831_v45, %v1831_v45  ;;  %v247_v7 = vmul.f32 %v1834_v55, %v1834_v55  ;;  %v1848_v11 = vsub.f32 %v1559_v58, %v180_v61  ;;  %933 = vmatpush2.bf16.msra.mxu0 %v1251_v53  ;;  %1213 = vmatpush2.bf16.msra.mxu1 %v1251_v53 }
  0xa4   :  { %v1851_v2 = vsub.f32 %v1561_v59, %v180_v61  ;;  %v286_v8 = vadd.f32 %v245_v48, %v244_v44  ;;  %v165_v15 = vpop.xlane.xlu0 %164  ;;  %934 = vmatprep.subr.bf16.mxu0 %v1252_v16  ;;  %1198 = vmatprep.subr.bf16.mxu1 %v1252_v16  ;;  %v1257_v61 = vld [vmem:[%s2144_s4 + $0xd0] ss:$8 sps:$4 sm:$0xff]  }
  0xa5   :  { %v1854_v9 = vsub.f32 %v1577_v0, %v181_v4  ;;  %v1857_v10 = vsub.f32 %v1589_v5, %v181_v4  ;;  %v188_v17 = vmul.f32 0.00390625, %v165_v15  ;;  %v289_v59 = vadd.f32 %v247_v7, %v246_v54 }
  0xa6   :  { %266 = vadd.xlane.f32.xlu1 %v265_v63  ;;  %287 = vadd.xlane.f32.xlu0 %v286_v8  ;;  %v168_v58 = vpop.xlane.xlu1 %167  ;;  %v232_v18 = vmul.f32 %v1848_v11, %v1848_v11  ;;  %v233_v0 = vmul.f32 %v1851_v2, %v1851_v2 }
  0xa7   :  { %v189_v19 = vmul.f32 0.00390625, %v168_v58  ;;  %v234_v5 = vmul.f32 %v1854_v9, %v1854_v9  ;;  %v235_v24 = vmul.f32 %v1857_v10, %v1857_v10  ;;  %v1874_v29 = vsub.f32 %v1603_v13, %v188_v17  ;;  %935 = vmatpush2.bf16.msra.mxu0 %v1254_v23  ;;  %1214 = vmatpush2.bf16.msra.mxu1 %v1254_v23  ;;  %v1263_v23 = vld [vmem:[%s2144_s4 + $0xb0] ss:$8 sps:$4 sm:$0xff]  }
  0xa8   :  { %v1877_v30 = vsub.f32 %v1605_v14, %v188_v17  ;;  %v268_v31 = vadd.f32 %v233_v0, %v232_v18  ;;  %v147_v33 = vpop.xlane.xlu0 %146  ;;  %v1260_v17 = vld [vmem:[%s2144_s4 + $0xc0] ss:$8 sps:$4 sm:$0xff]  }
  0xa9   :  { %v1880_v35 = vsub.f32 %v1617_v20, %v189_v19  ;;  %v1883_v32 = vsub.f32 %v1619_v21, %v189_v19  ;;  %v182_v36 = vmul.f32 0.00390625, %v147_v33  ;;  %v271_v39 = vadd.f32 %v235_v24, %v234_v5  ;;  %v1255_v20 = vld [vmem:[%s2144_s4 + $0xd4] ss:$8 sps:$4 sm:$0xff]  }
  0xaa   :  { %290 = vadd.xlane.f32.xlu1 %v289_v59  ;;  %269 = vadd.xlane.f32.xlu0 %v268_v31  ;;  %v150_v38 = vpop.xlane.xlu1 %149  ;;  %v248_v13 = vmul.f32 %v1874_v29, %v1874_v29  ;;  %v249_v14 = vmul.f32 %v1877_v30, %v1877_v30  ;;  %v1261_v24 = vld [vmem:[%s2144_s4 + $0xb4] ss:$8 sps:$4 sm:$0xff]  }
  0xab   :  { %v183_v21 = vmul.f32 0.00390625, %v150_v38  ;;  %v250_v43 = vmul.f32 %v1880_v35, %v1880_v35  ;;  %v251_v57 = vmul.f32 %v1883_v32, %v1883_v32  ;;  %v1900_v62 = vsub.f32 %v1635_v27, %v182_v36  ;;  %936 = vmatprep.subr.bf16.mxu0 %v1255_v20  ;;  %1199 = vmatprep.subr.bf16.mxu1 %v1255_v20  ;;  %v1266_v38 = vld [vmem:[%s2144_s4 + $0xa0] ss:$8 sps:$4 sm:$0xff]  }
  0xac   :  { %v1903_v63 = vsub.f32 %v1647_v34, %v182_v36  ;;  %v292_v44 = vadd.f32 %v249_v14, %v248_v13  ;;  %v171_v4 = vpop.xlane.xlu0 %170  ;;  %937 = vmatpush2.bf16.msra.mxu0 %v1257_v61  ;;  %1215 = vmatpush2.bf16.msra.mxu1 %v1257_v61  ;;  %v1264_v36 = vld [vmem:[%s2144_s4 + $0xa4] ss:$8 sps:$4 sm:$0xff]   ;;  %v1269_v13 = vld [vmem:[%s2144_s4 + $0x90] ss:$8 sps:$4 sm:$0xff]   ;;  %v1272_v20 = vld [vmem:[%s2144_s4 + $0x80] ss:$8 sps:$4 sm:$0xff]  }
  0xad   :  { %v1906_v48 = vsub.f32 %v1661_v41, %v183_v21  ;;  %v1909_v53 = vsub.f32 %v1663_v42, %v183_v21  ;;  %v190_v54 = vmul.f32 0.00390625, %v171_v4  ;;  %v295_v7 = vadd.f32 %v251_v57, %v250_v43  ;;  %v1258_v41 = vld [vmem:[%s2144_s4 + $0xc4] ss:$8 sps:$4 sm:$0xff]  }
  0xae   :  { %272 = vadd.xlane.f32.xlu1 %v271_v39  ;;  %293 = vadd.xlane.f32.xlu0 %v292_v44  ;;  %v174_v27 = vpop.xlane.xlu1 %173  ;;  %v236_v34 = vmul.f32 %v1900_v62, %v1900_v62  ;;  %v237_v8 = vmul.f32 %v1903_v63, %v1903_v63  ;;  %v1267_v39 = vld [vmem:[%s2144_s4 + $0x94] ss:$8 sps:$4 sm:$0xff]   ;;  %v1270_v14 = vld [vmem:[%s2144_s4 + $0x84] ss:$8 sps:$4 sm:$0xff]  }
  0xaf   :  { %v191_v42 = vmul.f32 0.00390625, %v174_v27  ;;  %v238_v15 = vmul.f32 %v1906_v48, %v1906_v48  ;;  %v239_v16 = vmul.f32 %v1909_v53, %v1909_v53  ;;  %v1926_v58 = vsub.f32 %v1675_v47, %v190_v54  ;;  %938 = vmatprep.subr.bf16.mxu0 %v1258_v41  ;;  %1200 = vmatprep.subr.bf16.mxu1 %v1258_v41 }
  0xb0   :  { %v1929_v59 = vsub.f32 %v1677_v49, %v190_v54  ;;  %v274_v18 = vadd.f32 %v237_v8, %v236_v34  ;;  %939 = vmatpush2.bf16.msra.mxu0 %v1260_v17  ;;  %1216 = vmatpush2.bf16.msra.mxu1 %v1260_v17  ;;  %v386_v27 = vlaneseq }
  0xb1   :  { %v1932_v0 = vsub.f32 %v1693_v56, %v191_v42  ;;  %v1935_v19 = vsub.f32 %v1699_v60, %v191_v42  ;;  %v277_v5 = vadd.f32 %v239_v16, %v238_v15  ;;  %v252_v47 = vmul.f32 %v1926_v58, %v1926_v58  ;;  %940 = vmatprep.subr.bf16.mxu0 %v1261_v24 }
  0xb2   :  { %296 = vadd.xlane.f32.xlu1 %v295_v7  ;;  %275 = vadd.xlane.f32.xlu0 %v274_v18  ;;  %v253_v49 = vmul.f32 %v1929_v59, %v1929_v59  ;;  %v387_v16 = vshrl.u32 %v386_v27, 7 }
  0xb3   :  { %v254_v56 = vmul.f32 %v1932_v0, %v1932_v0  ;;  %v255_v60 = vmul.f32 %v1935_v19, %v1935_v19  ;;  %1201 = vmatprep.subr.bf16.mxu1 %v1261_v24 }
  0xb4   :  { %v298_v31 = vadd.f32 %v253_v49, %v252_v47  ;;  %941 = vmatpush2.bf16.msra.mxu0 %v1263_v23  ;;  %1217 = vmatpush2.bf16.msra.mxu1 %v1263_v23  ;;  %v1974_v23 = vsub.s32 0, %v387_v16 }
  0xb5   :  { %v301_v33 = vadd.f32 %v255_v60, %v254_v56  ;;  %942 = vmatprep.subr.bf16.mxu0 %v1264_v36  ;;  %1202 = vmatprep.subr.bf16.mxu1 %v1264_v36  ;;  %v1969_v56 = vsub.s32 1, %v387_v16  ;;  %v384_v60 = vld [vmem:[%s2142_s2] sm:$0x3]  ;;  %s1349_s2 = smov [#allocation5]  }
  0xb6   :  { %278 = vadd.xlane.f32.xlu1 %v277_v5  ;;  %299 = vadd.xlane.f32.xlu0 %v298_v31 }
  0xb8   :  { %943 = vmatpush2.bf16.msra.mxu0 %v1266_v38  ;;  %1218 = vmatpush2.bf16.msra.mxu1 %v1266_v38 }
  0xb9   :  { %944 = vmatprep.subr.bf16.mxu0 %v1267_v39  ;;  %1203 = vmatprep.subr.bf16.mxu1 %v1267_v39 }
  0xba   :  { %302 = vadd.xlane.f32.xlu1 %v301_v33  ;;  %v428_v33 = vld [vmem:[%s2143_s3] sm:$0x3]  ;;  %s1078_s3 = sshll.u32 %s1349_s2, 4  ;;  %s1079_s3 = int_to_ptr.vmem [resolvable:$true] %s1078_s3 }
  0xbb   :  { %s1305_s29 = scalar_lea.vmem %s1079_s3, 4096  ;;  %p1310_p1 = scmp.lt.s32.totalorder %s1079_s3, %s1079_s3 }
  0xbc   :  { %945 = vmatpush2.bf16.msra.mxu0 %v1269_v13  ;;  %1219 = vmatpush2.bf16.msra.mxu1 %v1269_v13  ;;  %p1306_p0 = scmp.ne.s32.totalorder %s1079_s3, %s1305_s29  ;;  %p1311_p2 = scmp.lt.s32.totalorder %s1305_s29, %s1305_s29 }
  0xbd   :  { %946 = vmatprep.subr.bf16.mxu0 %v1270_v14  ;;  %1204 = vmatprep.subr.bf16.mxu1 %v1270_v14 }
  0xbe   :  { %p1312_p3 = por %p1311_p2, %p1310_p1 }
  0xc0   :  { %947 = vmatpush2.bf16.msra.mxu0 %v1272_v20  ;;  %1220 = vmatpush2.bf16.msra.mxu1 %v1272_v20  ;;  %v1980_v20 = vrot.slane %v384_v60, %v1969_v56  ;;  %p1313_p4 = pnand %p1312_p3, %p1306_p0 }
 0x123   :  { %v258_v21 = vpop.xlane.xlu0 %257 }
 0x124   :  { %v304_v43 = vmul.f32 0.00390625, %v258_v21 }
 0x126   :  { %v320_v57 = vadd.f32 1e-05, %v304_v43  ;;  %v1983_v43 = vrot.slane %v384_v60, %v1974_v23 }
 0x127   :  { %v261_v61 = vpop.xlane.xlu1 %260  ;;  %v282_v44 = vpop.xlane.xlu0 %281 }
 0x128   :  { %1273 = vrsqrt.f32 %v320_v57  ;;  %v305_v4 = vmul.f32 0.00390625, %v261_v61  ;;  %v312_v54 = vmul.f32 0.00390625, %v282_v44  ;;  %v1986_v57 = vrot.slane %v428_v33, %v1969_v56 }
 0x12a   :  { %v321_v7 = vadd.f32 1e-05, %v305_v4  ;;  %v328_v34 = vadd.f32 1e-05, %v312_v54 }
 0x12b   :  { %v285_v8 = vpop.xlane.xlu1 %284  ;;  %v264_v41 = vpop.xlane.xlu0 %263 }
 0x12c   :  { %1275 = vrsqrt.f32 %v321_v7  ;;  %v313_v42 = vmul.f32 0.00390625, %v285_v8  ;;  %v306_v15 = vmul.f32 0.00390625, %v264_v41 }
 0x12d   :  { %1277 = vrsqrt.f32 %v328_v34  ;;  %v1991_v34 = vrot.slane %v428_v33, %v1974_v23 }
 0x12e   :  { %v329_v17 = vadd.f32 1e-05, %v313_v42  ;;  %v322_v18 = vadd.f32 1e-05, %v306_v15 }
 0x12f   :  { %v267_v5 = vpop.xlane.xlu1 %266  ;;  %v288_v47 = vpop.xlane.xlu0 %287 }
 0x130   :  { %1279 = vrsqrt.f32 %v329_v17  ;;  %v307_v49 = vmul.f32 0.00390625, %v267_v5  ;;  %v314_v24 = vmul.f32 0.00390625, %v288_v47 }
 0x131   :  { %1281 = vrsqrt.f32 %v322_v18 }
 0x132   :  { %v323_v31 = vadd.f32 1e-05, %v307_v49  ;;  %v330_v36 = vadd.f32 1e-05, %v314_v24 }
 0x133   :  { %v291_v38 = vpop.xlane.xlu1 %290  ;;  %v270_v39 = vpop.xlane.xlu0 %269 }
 0x134   :  { %1283 = vrsqrt.f32 %v323_v31  ;;  %v315_v13 = vmul.f32 0.00390625, %v291_v38  ;;  %v308_v14 = vmul.f32 0.00390625, %v270_v39 }
 0x135   :  { %v1274_v21 = vpop.eup %1273  ;;  %1285 = vrsqrt.f32 %v330_v36 }
 0x136   :  { %v331_v61 = vadd.f32 1e-05, %v315_v13  ;;  %v324_v44 = vadd.f32 1e-05, %v308_v14  ;;  %v353_v4 = vmul.f32 %v1274_v21, %v1768_v50  ;;  %v352_v54 = vmul.f32 %v1274_v21, %v1765_v46 }
 0x137   :  { %v273_v27 = vpop.xlane.xlu1 %272  ;;  %v294_v7 = vpop.xlane.xlu0 %293 }
 0x138   :  { %1287 = vrsqrt.f32 %v331_v61  ;;  %v309_v8 = vmul.f32 0.00390625, %v273_v27  ;;  %v316_v41 = vmul.f32 0.00390625, %v294_v7  ;;  %v397_v42 = vmul.f32 %v1980_v20, %v353_v4 }
 0x139   :  { %v1276_v15 = vpop.eup %1275  ;;  %1289 = vrsqrt.f32 %v324_v44  ;;  %v396_v16 = vmul.f32 %v1983_v43, %v352_v54 }
 0x13a   :  { %v1278_v17 = vpop.eup %1277  ;;  %v325_v18 = vadd.f32 1e-05, %v309_v8  ;;  %v332_v50 = vadd.f32 1e-05, %v316_v41  ;;  %v355_v46 = vmul.f32 %v1276_v15, %v1788_v12  ;;  %v441_v5 = vadd.f32 %v1986_v57, %v397_v42 }
 0x13b   :  { %v297_v47 = vpop.xlane.xlu1 %296  ;;  %v276_v49 = vpop.xlane.xlu0 %275  ;;  %v354_v24 = vmul.f32 %v1276_v15, %v1785_v1  ;;  %v440_v60 = vadd.f32 %v1991_v34, %v396_v16  ;;  %v369_v31 = vmul.f32 %v1278_v17, %v1774_v52  ;;  %v368_v33 = vmul.f32 %v1278_v17, %v1771_v51 }
 0x13c   :  { %1291 = vrsqrt.f32 %v325_v18  ;;  %v317_v36 = vmul.f32 0.00390625, %v297_v47  ;;  %v310_v38 = vmul.f32 0.00390625, %v276_v49  ;;  %v399_v39 = vmul.f32 %v1980_v20, %v355_v46 }
 0x13d   :  { %v1280_v13 = vpop.eup %1279  ;;  %1293 = vrsqrt.f32 %v332_v50  ;;  %v398_v12 = vmul.f32 %v1983_v43, %v354_v24  ;;  %v413_v14 = vmul.f32 %v1980_v20, %v369_v31  ;;  %v412_v21 = vmul.f32 %v1983_v43, %v368_v33 }
 0x13e   :  { %v333_v1 = vadd.f32 1e-05, %v317_v36  ;;  %v326_v61 = vadd.f32 1e-05, %v310_v38  ;;  %v443_v44 = vadd.f32 %v1986_v57, %v399_v39  ;;  %v371_v52 = vmul.f32 %v1280_v13, %v1794_v6  ;;  %v1282_v51 = vpop.eup %1281 }
 0x13f   :  { %v279_v4 = vpop.xlane.xlu1 %278  ;;  %v300_v54 = vpop.xlane.xlu0 %299  ;;  %v442_v27 = vadd.f32 %v1991_v34, %v398_v12  ;;  %v457_v7 = vadd.f32 %v1986_v57, %v413_v14  ;;  %v370_v8 = vmul.f32 %v1280_v13, %v1791_v3  ;;  %v456_v41 = vadd.f32 %v1991_v34, %v412_v21 }
 0x140   :  { %1295 = vrsqrt.f32 %v333_v1  ;;  %v311_v42 = vmul.f32 0.00390625, %v279_v4  ;;  %v318_v15 = vmul.f32 0.00390625, %v300_v54  ;;  %v1174_v16 = vpack.c.bf16 %v443_v44, %v441_v5 }
 0x141   :  { %v1284_v17 = vpop.eup %1283  ;;  %1297 = vrsqrt.f32 %v326_v61  ;;  %v1173_v18 = vpack.c.bf16 %v442_v27, %v440_v60  ;;  %v415_v6 = vmul.f32 %v1980_v20, %v371_v52  ;;  %v414_v50 = vmul.f32 %v1983_v43, %v370_v8 }
 0x142   :  { %v327_v46 = vadd.f32 1e-05, %v311_v42  ;;  %v334_v47 = vadd.f32 1e-05, %v318_v15  ;;  %948 = vmatprep.mubr.bf16.mxu0 %v1174_v16  ;;  %v357_v49 = vmul.f32 %v1282_v51, %v1808_v22  ;;  %v359_v3 = vmul.f32 %v1284_v17, %v1814_v26  ;;  %v1286_v36 = vpop.eup %1285 }
 0x143   :  { %v303_v24 = vpop.xlane.xlu1 %302  ;;  %949 = vmatmul.mubr.bf16.vlgmr.msra.gmra.mxu0 %v1173_v18  ;;  %v459_v31 = vadd.f32 %v1986_v57, %v415_v6  ;;  %v458_v5 = vadd.f32 %v1991_v34, %v414_v50  ;;  %v356_v33 = vmul.f32 %v1282_v51, %v1805_v28  ;;  %v358_v60 = vmul.f32 %v1284_v17, %v1811_v25 }
 0x144   :  { %1299 = vrsqrt.f32 %v327_v46  ;;  %v319_v38 = vmul.f32 0.00390625, %v303_v24  ;;  %v401_v39 = vmul.f32 %v1980_v20, %v357_v49  ;;  %v403_v13 = vmul.f32 %v1980_v20, %v359_v3 }
 0x145   :  { %v1288_v22 = vpop.eup %1287  ;;  %1301 = vrsqrt.f32 %v334_v47  ;;  %v1182_v26 = vpack.c.bf16 %v459_v31, %v457_v7  ;;  %v1181_v12 = vpack.c.bf16 %v458_v5, %v456_v41  ;;  %v400_v14 = vmul.f32 %v1983_v43, %v356_v33 }
 0x146   :  { %v1290_v21 = vpop.eup %1289  ;;  %v335_v1 = vadd.f32 1e-05, %v319_v38  ;;  %v445_v61 = vadd.f32 %v1986_v57, %v401_v39  ;;  %v447_v28 = vadd.f32 %v1986_v57, %v403_v13  ;;  %v402_v25 = vmul.f32 %v1983_v43, %v358_v60 }
 0x147   :  { %988 = vmatprep.mubr.bf16.mxu1 %v1182_v26  ;;  %v444_v44 = vadd.f32 %v1991_v34, %v400_v14  ;;  %v373_v52 = vmul.f32 %v1286_v36, %v1828_v40  ;;  %v375_v51 = vmul.f32 %v1288_v22, %v1834_v55  ;;  %v372_v4 = vmul.f32 %v1286_v36, %v1825_v37 }
 0x148   :  { %1303 = vrsqrt.f32 %v335_v1  ;;  %989 = vmatmul.mubr.bf16.vlgmr.msra.gmra.mxu1 %v1181_v12  ;;  %v1176_v54 = vpack.c.bf16 %v447_v28, %v445_v61  ;;  %v446_v27 = vadd.f32 %v1991_v34, %v402_v25  ;;  %v374_v7 = vmul.f32 %v1288_v22, %v1831_v45 }
 0x149   :  { %v1292_v8 = vpop.eup %1291  ;;  %v417_v41 = vmul.f32 %v1980_v20, %v373_v52  ;;  %v419_v42 = vmul.f32 %v1980_v20, %v375_v51  ;;  %v416_v15 = vmul.f32 %v1983_v43, %v372_v4  ;;  %v361_v40 = vmul.f32 %v1290_v21, %v1851_v2 }
 0x14a   :  { %v1294_v16 = vpop.eup %1293  ;;  %958 = vmatprep.mubr.bf16.mxu0 %v1176_v54  ;;  %v1175_v55 = vpack.c.bf16 %v446_v27, %v444_v44  ;;  %v418_v37 = vmul.f32 %v1983_v43, %v374_v7  ;;  %v363_v17 = vmul.f32 %v1292_v8, %v1857_v10  ;;  %v360_v18 = vmul.f32 %v1290_v21, %v1848_v11 }
 0x14b   :  { %v461_v45 = vadd.f32 %v1986_v57, %v417_v41  ;;  %v463_v6 = vadd.f32 %v1986_v57, %v419_v42  ;;  %v460_v50 = vadd.f32 %v1991_v34, %v416_v15  ;;  %v405_v46 = vmul.f32 %v1980_v20, %v361_v40 }
 0x14c   :  { %959 = vmatmul.mubr.bf16.gmra.mxu0 %v1175_v55  ;;  %v462_v2 = vadd.f32 %v1991_v34, %v418_v37  ;;  %v407_v47 = vmul.f32 %v1980_v20, %v363_v17  ;;  %v362_v49 = vmul.f32 %v1292_v8, %v1854_v9  ;;  %v404_v3 = vmul.f32 %v1983_v43, %v360_v18 }
 0x14d   :  { %v1296_v10 = vpop.eup %1295  ;;  %v1184_v24 = vpack.c.bf16 %v463_v6, %v461_v45  ;;  %v449_v11 = vadd.f32 %v1986_v57, %v405_v46  ;;  %v377_v31 = vmul.f32 %v1294_v16, %v1877_v30  ;;  %v376_v5 = vmul.f32 %v1294_v16, %v1874_v29 }
 0x14e   :  { %v1298_v33 = vpop.eup %1297  ;;  %v1183_v60 = vpack.c.bf16 %v462_v2, %v460_v50  ;;  %v451_v36 = vadd.f32 %v1986_v57, %v407_v47  ;;  %v406_v38 = vmul.f32 %v1983_v43, %v362_v49  ;;  %v448_v39 = vadd.f32 %v1991_v34, %v404_v3 }
 0x14f   :  { %998 = vmatprep.mubr.bf16.mxu1 %v1184_v24  ;;  %v379_v9 = vmul.f32 %v1296_v10, %v1883_v32  ;;  %v421_v13 = vmul.f32 %v1980_v20, %v377_v31  ;;  %v378_v22 = vmul.f32 %v1296_v10, %v1880_v35  ;;  %v420_v26 = vmul.f32 %v1983_v43, %v376_v5 }
 0x150   :  { %999 = vmatmul.mubr.bf16.gmra.mxu1 %v1183_v60  ;;  %v1178_v30 = vpack.c.bf16 %v451_v36, %v449_v11  ;;  %v450_v29 = vadd.f32 %v1991_v34, %v406_v38  ;;  %v365_v12 = vmul.f32 %v1298_v33, %v1903_v63  ;;  %v364_v14 = vmul.f32 %v1298_v33, %v1900_v62 }
 0x151   :  { %v1300_v21 = vpop.eup %1299  ;;  %v423_v1 = vmul.f32 %v1980_v20, %v379_v9  ;;  %v465_v61 = vadd.f32 %v1986_v57, %v421_v13  ;;  %v422_v32 = vmul.f32 %v1983_v43, %v378_v22  ;;  %v464_v28 = vadd.f32 %v1991_v34, %v420_v26 }
 0x152   :  { %v1302_v35 = vpop.eup %1301  ;;  %968 = vmatprep.mubr.bf16.mxu0 %v1178_v30  ;;  %v1177_v25 = vpack.c.bf16 %v450_v29, %v448_v39  ;;  %v367_v44 = vmul.f32 %v1300_v21, %v1909_v53  ;;  %v409_v52 = vmul.f32 %v1980_v20, %v365_v12  ;;  %v366_v63 = vmul.f32 %v1300_v21, %v1906_v48 }
 0x153   :  { %v467_v62 = vadd.f32 %v1986_v57, %v423_v1  ;;  %v466_v51 = vadd.f32 %v1991_v34, %v422_v32  ;;  %v408_v4 = vmul.f32 %v1983_v43, %v364_v14  ;;  %v381_v54 = vmul.f32 %v1302_v35, %v1929_v59 }
 0x154   :  { %969 = vmatmul.mubr.bf16.gmra.mxu0 %v1177_v25  ;;  %v411_v27 = vmul.f32 %v1980_v20, %v367_v44  ;;  %v453_v7 = vadd.f32 %v1986_v57, %v409_v52  ;;  %v410_v8 = vmul.f32 %v1983_v43, %v366_v63  ;;  %v380_v53 = vmul.f32 %v1302_v35, %v1926_v58 }
 0x155   :  { %v1304_v41 = vpop.eup %1303  ;;  %v1186_v42 = vpack.c.bf16 %v467_v62, %v465_v61  ;;  %v1185_v48 = vpack.c.bf16 %v466_v51, %v464_v28  ;;  %v452_v15 = vadd.f32 %v1991_v34, %v408_v4  ;;  %v425_v40 = vmul.f32 %v1980_v20, %v381_v54 }
 0x156   :  { %v455_v16 = vadd.f32 %v1986_v57, %v411_v27  ;;  %v454_v59 = vadd.f32 %v1991_v34, %v410_v8  ;;  %v383_v55 = vmul.f32 %v1304_v41, %v1935_v19  ;;  %v382_v37 = vmul.f32 %v1304_v41, %v1932_v0 }
 0x157   :  { %1008 = vmatprep.mubr.bf16.mxu1 %v1186_v42  ;;  %v424_v17 = vmul.f32 %v1983_v43, %v380_v53  ;;  %v469_v50 = vadd.f32 %v1986_v57, %v425_v40 }
 0x158   :  { %1009 = vmatmul.mubr.bf16.gmra.mxu1 %v1185_v48  ;;  %v1180_v58 = vpack.c.bf16 %v455_v16, %v453_v7  ;;  %v1179_v18 = vpack.c.bf16 %v454_v59, %v452_v15  ;;  %v427_v45 = vmul.f32 %v1980_v20, %v383_v55  ;;  %v426_v6 = vmul.f32 %v1983_v43, %v382_v37 }
 0x159   :  { %v468_v2 = vadd.f32 %v1991_v34, %v424_v17 }
 0x15a   :  { %978 = vmatprep.mubr.bf16.mxu0 %v1180_v58  ;;  %v471_v46 = vadd.f32 %v1986_v57, %v427_v45  ;;  %v470_v19 = vadd.f32 %v1991_v34, %v426_v6 }
 0x15c   :  { %979 = vmatmul.mubr.bf16.gmra.mxu0 %v1179_v18  ;;  %v1188_v0 = vpack.c.bf16 %v471_v46, %v469_v50  ;;  %v1187_v47 = vpack.c.bf16 %v470_v19, %v468_v2 }
 0x15e   :  { %1018 = vmatprep.mubr.bf16.mxu1 %v1188_v0 }
 0x160   :  { %1019 = vmatmul.mubr.bf16.gmra.mxu1 %v1187_v47 }
 0x161   :  { %1316 = shalt.err (!%p1313_p4)
}
 0x162   :  { %s1350_s30 = smov 256   ;;  %s1351_s8 = smov 16   ;;  %v664_v20 = vld [vmem:[%s2145_s5] sm:$0x3] }
 0x163   :  { %1084 = dma.vmem_to_hbm [thread:$0]  %s1079_s3, 4096, %s2147_s7, [#allocation6], %s1350_s30, %s1350_s30, %s1351_s8   ;;  %v2097_v43 = vrot.slane %v664_v20, %v1974_v23  ;;  %v2100_v57 = vrot.slane %v664_v20, %v1969_v56 }
 0x164   :  { %s1352_s5 = smov [#allocation3]  }
 0x165   :  { %s1066_s7 = sshll.u32 %s1352_s5, 4  ;;  %s1067_s7 = int_to_ptr.vmem [resolvable:$true] %s1066_s7 }
 0x166   :  { %s1325_s13 = scalar_lea.vmem %s1067_s7, 4096  ;;  %p1330_p6 = scmp.lt.s32.totalorder %s1067_s7, %s1067_s7 }
 0x167   :  { %p1326_p5 = scmp.ne.s32.totalorder %s1067_s7, %s1325_s13  ;;  %p1331_p7 = scmp.lt.s32.totalorder %s1325_s13, %s1325_s13 }
 0x169   :  { %p1332_p8 = por %p1331_p7, %p1330_p6 }
 0x16b   :  { %p1333_p9 = pnand %p1332_p8, %p1326_p5 }
 0x203   :  { %v950_v34 = vpop.f32.mrf.mxu0 }
 0x204   :  { %v951_v49 = vadd.f32 %v950_v34, %v2097_v43 }
 0x205   :  { %v952_v3 = vpop.f32.mrf.mxu0 }
 0x206   :  { %1029 = vst [vmem:[#allocation3] sm:$0xff] %v951_v49  ;;  %v953_v10 = vadd.f32 %v952_v3, %v2100_v57 }
 0x207   :  { %v954_v24 = vpop.f32.mrf.mxu0 }
 0x208   :  { %1030 = vst [vmem:[#allocation3 + $0x8] sm:$0xff] %v953_v10  ;;  %v955_v11 = vadd.f32 %v954_v24, %v2097_v43  ;;  %v990_v31 = vpop.f32.mrf.mxu1 }
 0x209   :  { %v991_v5 = vadd.f32 %v990_v31, %v2097_v43  ;;  %v956_v33 = vpop.f32.mrf.mxu0 }
 0x20a   :  { %1031 = vst [vmem:[#allocation3 + $0x10] sm:$0xff] %v955_v11  ;;  %v957_v23 = vadd.f32 %v956_v33, %v2100_v57  ;;  %v992_v56 = vpop.f32.mrf.mxu1 }
 0x20b   :  { %1045 = vst [vmem:[#allocation3 + $0x80] sm:$0xff] %v991_v5  ;;  %v993_v60 = vadd.f32 %v992_v56, %v2100_v57 }
 0x20c   :  { %1032 = vst [vmem:[#allocation3 + $0x18] sm:$0xff] %v957_v23  ;;  %v960_v36 = vpop.f32.mrf.mxu0  ;;  %v994_v38 = vpop.f32.mrf.mxu1 }
 0x20d   :  { %1046 = vst [vmem:[#allocation3 + $0x88] sm:$0xff] %v993_v60  ;;  %v961_v39 = vadd.f32 %v960_v36, %v2097_v43  ;;  %v995_v9 = vadd.f32 %v994_v38, %v2097_v43 }
 0x20e   :  { %v962_v13 = vpop.f32.mrf.mxu0  ;;  %v996_v22 = vpop.f32.mrf.mxu1 }
 0x20f   :  { %1033 = vst [vmem:[#allocation3 + $0x20] sm:$0xff] %v961_v39  ;;  %1047 = vst [vmem:[#allocation3 + $0x90] sm:$0xff] %v995_v9  ;;  %v963_v26 = vadd.f32 %v962_v13, %v2100_v57  ;;  %v997_v30 = vadd.f32 %v996_v22, %v2100_v57 }
 0x210   :  { %v964_v29 = vpop.f32.mrf.mxu0  ;;  %v1000_v12 = vpop.f32.mrf.mxu1 }
 0x211   :  { %1034 = vst [vmem:[#allocation3 + $0x28] sm:$0xff] %v963_v26  ;;  %1048 = vst [vmem:[#allocation3 + $0x98] sm:$0xff] %v997_v30  ;;  %v965_v14 = vadd.f32 %v964_v29, %v2097_v43  ;;  %v1001_v21 = vadd.f32 %v1000_v12, %v2097_v43 }
 0x212   :  { %v966_v1 = vpop.f32.mrf.mxu0  ;;  %v1002_v61 = vpop.f32.mrf.mxu1 }
 0x213   :  { %1035 = vst [vmem:[#allocation3 + $0x30] sm:$0xff] %v965_v14  ;;  %1049 = vst [vmem:[#allocation3 + $0xa0] sm:$0xff] %v1001_v21  ;;  %v967_v32 = vadd.f32 %v966_v1, %v2100_v57  ;;  %v1003_v28 = vadd.f32 %v1002_v61, %v2100_v57 }
 0x214   :  { %v970_v35 = vpop.f32.mrf.mxu0  ;;  %v1004_v25 = vpop.f32.mrf.mxu1 }
 0x215   :  { %1036 = vst [vmem:[#allocation3 + $0x38] sm:$0xff] %v967_v32  ;;  %1050 = vst [vmem:[#allocation3 + $0xa8] sm:$0xff] %v1003_v28  ;;  %v971_v44 = vadd.f32 %v970_v35, %v2097_v43  ;;  %v1005_v52 = vadd.f32 %v1004_v25, %v2097_v43 }
 0x216   :  { %v972_v63 = vpop.f32.mrf.mxu0  ;;  %v1006_v62 = vpop.f32.mrf.mxu1 }
 0x217   :  { %1037 = vst [vmem:[#allocation3 + $0x40] sm:$0xff] %v971_v44  ;;  %1051 = vst [vmem:[#allocation3 + $0xb0] sm:$0xff] %v1005_v52  ;;  %v973_v51 = vadd.f32 %v972_v63, %v2100_v57  ;;  %v1007_v4 = vadd.f32 %v1006_v62, %v2100_v57 }
 0x218   :  { %v974_v54 = vpop.f32.mrf.mxu0  ;;  %v1010_v27 = vpop.f32.mrf.mxu1 }
 0x219   :  { %1038 = vst [vmem:[#allocation3 + $0x48] sm:$0xff] %v973_v51  ;;  %1052 = vst [vmem:[#allocation3 + $0xb8] sm:$0xff] %v1007_v4  ;;  %v975_v7 = vadd.f32 %v974_v54, %v2097_v43  ;;  %v1011_v8 = vadd.f32 %v1010_v27, %v2097_v43 }
 0x21a   :  { %v976_v53 = vpop.f32.mrf.mxu0  ;;  %v1012_v41 = vpop.f32.mrf.mxu1 }
 0x21b   :  { %1039 = vst [vmem:[#allocation3 + $0x50] sm:$0xff] %v975_v7  ;;  %1053 = vst [vmem:[#allocation3 + $0xc0] sm:$0xff] %v1011_v8  ;;  %v977_v42 = vadd.f32 %v976_v53, %v2100_v57  ;;  %v1013_v48 = vadd.f32 %v1012_v41, %v2100_v57 }
 0x21c   :  { %v980_v15 = vpop.f32.mrf.mxu0  ;;  %v1014_v40 = vpop.f32.mrf.mxu1 }
 0x21d   :  { %1040 = vst [vmem:[#allocation3 + $0x58] sm:$0xff] %v977_v42  ;;  %1054 = vst [vmem:[#allocation3 + $0xc8] sm:$0xff] %v1013_v48  ;;  %v981_v16 = vadd.f32 %v980_v15, %v2097_v43  ;;  %v1015_v59 = vadd.f32 %v1014_v40, %v2097_v43 }
 0x21e   :  { %v982_v55 = vpop.f32.mrf.mxu0  ;;  %v1016_v37 = vpop.f32.mrf.mxu1 }
 0x21f   :  { %1041 = vst [vmem:[#allocation3 + $0x60] sm:$0xff] %v981_v16  ;;  %1055 = vst [vmem:[#allocation3 + $0xd0] sm:$0xff] %v1015_v59  ;;  %v983_v17 = vadd.f32 %v982_v55, %v2100_v57  ;;  %v1017_v58 = vadd.f32 %v1016_v37, %v2100_v57 }
 0x220   :  { %v984_v18 = vpop.f32.mrf.mxu0  ;;  %v1020_v45 = vpop.f32.mrf.mxu1 }
 0x221   :  { %1042 = vst [vmem:[#allocation3 + $0x68] sm:$0xff] %v983_v17  ;;  %1056 = vst [vmem:[#allocation3 + $0xd8] sm:$0xff] %v1017_v58  ;;  %v985_v6 = vadd.f32 %v984_v18, %v2097_v43  ;;  %v1021_v50 = vadd.f32 %v1020_v45, %v2097_v43 }
 0x222   :  { %v986_v46 = vpop.f32.mrf.mxu0  ;;  %v1022_v2 = vpop.f32.mrf.mxu1 }
 0x223   :  { %1043 = vst [vmem:[#allocation3 + $0x70] sm:$0xff] %v985_v6  ;;  %1057 = vst [vmem:[#allocation3 + $0xe0] sm:$0xff] %v1021_v50  ;;  %v987_v19 = vadd.f32 %v986_v46, %v2100_v57  ;;  %v1023_v0 = vadd.f32 %v1022_v2, %v2100_v57 }
 0x224   :  { %v1024_v47 = vpop.f32.mrf.mxu1 }
 0x225   :  { %1044 = vst [vmem:[#allocation3 + $0x78] sm:$0xff] %v987_v19  ;;  %1058 = vst [vmem:[#allocation3 + $0xe8] sm:$0xff] %v1023_v0  ;;  %v1025_v20 = vadd.f32 %v1024_v47, %v2097_v43 }
 0x226   :  { %v1026_v34 = vpop.f32.mrf.mxu1 }
 0x227   :  { %1059 = vst [vmem:[#allocation3 + $0xf0] sm:$0xff] %v1025_v20  ;;  %v1027_v49 = vadd.f32 %v1026_v34, %v2100_v57 }
 0x229   :  { %1060 = vst [vmem:[#allocation3 + $0xf8] sm:$0xff] %v1027_v49 }
 0x22a   :  { %1336 = shalt.err (!%p1333_p9)
}
 0x22b   :  { %1072 = dma.vmem_to_hbm [thread:$0]  %s1067_s7, 4096, %s2146_s6, [#allocation4], %s1350_s30, %s1350_s30, %s1351_s8  }
 0x22c   :  { %1345 = dma.done.wait [#allocation4], 4096  }
 0x22d   :  { %1346 = vsyncadd [#allocation4], 4294963200 }
 0x22e   :  { %1347 = dma.done.wait [#allocation6], 4096  }
 0x22f   :  { %1348 = vsyncadd [#allocation6], 4294963200 }
 0x230   :  { %1091 = vsyncpa [#allocation4], 1 }
 0x231   :  { %1092 = vsyncpa [#allocation6], 1 }

</bundles_post_ra>
